<compile_context>
chip_gen: v7x
topology: tpu7x:2x2x1
jax: 0.10.0
libtpu: 0.0.40
codegen_flags: <defaults>
</compile_context>

<pallas_src>
import functools

import jax
import jax.numpy as jnp
import numpy as np
from jax import lax
from jax.experimental import pallas as pl
from jax.experimental.pallas import tpu as pltpu

LANE = 128


# ----------------------------- kernel factory -----------------------------

def _make_kernel(n_dihedrals, order, chunk_rows, num_chunks, cos_only):
    """Build the torsion-energy kernel for static (D, order, chunking) config."""

    def _chunk_cos(const_ref, a_ref, d_ref, o_ref, row0):
        # cos-only path (phase in {0, pi}): Chebyshev recurrence, no sin().
        acc = jnp.full((chunk_rows, LANE), const_ref[0], dtype=jnp.float32)
        for dd in range(n_dihedrals):          # D is small -> static unroll
            theta = d_ref[dd, pl.ds(row0, chunk_rows), :]
            c = jnp.cos(theta)                 # one transcendental per dihedral
            acc = acc + a_ref[dd * order] * c  # n = 1
            if order >= 2:
                c2 = c + c                     # 2*cos(theta)
                cn_m1 = c
                cn = c2 * c - 1.0              # cos(2*theta)
                acc = acc + a_ref[dd * order + 1] * cn
                for nn in range(2, order):     # c_{n+1} = 2c*c_n - c_{n-1}
                    cn_m1, cn = cn, c2 * cn - cn_m1
                    acc = acc + a_ref[dd * order + nn] * cn
        o_ref[pl.ds(row0, chunk_rows), :] = acc

    def _chunk_gen(const_ref, a_ref, b_ref, d_ref, o_ref, row0):
        # general path (arbitrary phase): angle-addition recurrence.
        acc = jnp.full((chunk_rows, LANE), const_ref[0], dtype=jnp.float32)
        for dd in range(n_dihedrals):
            theta = d_ref[dd, pl.ds(row0, chunk_rows), :]
            c = jnp.cos(theta)
            s = jnp.sin(theta)
            cn, sn = c, s
            acc = acc + a_ref[dd * order] * cn + b_ref[dd * order] * sn
            for nn in range(1, order):
                cn, sn = cn * c - sn * s, sn * c + cn * s
                acc = (acc + a_ref[dd * order + nn] * cn
                           + b_ref[dd * order + nn] * sn)
        o_ref[pl.ds(row0, chunk_rows), :] = acc

    if cos_only:
        def kernel(const_ref, a_ref, d_ref, o_ref):
            if num_chunks == 1:
                _chunk_cos(const_ref, a_ref, d_ref, o_ref, 0)
            else:
                def body(r, carry):
                    row0 = pl.multiple_of(r * chunk_rows, chunk_rows)
                    _chunk_cos(const_ref, a_ref, d_ref, o_ref, row0)
                    return carry
                lax.fori_loop(0, num_chunks, body, 0,
                              unroll=True if num_chunks <= 4 else False)
        return kernel
    else:
        def kernel(const_ref, a_ref, b_ref, d_ref, o_ref):
            if num_chunks == 1:
                _chunk_gen(const_ref, a_ref, b_ref, d_ref, o_ref, 0)
            else:
                def body(r, carry):
                    row0 = pl.multiple_of(r * chunk_rows, chunk_rows)
                    _chunk_gen(const_ref, a_ref, b_ref, d_ref, o_ref, row0)
                    return carry
                lax.fori_loop(0, num_chunks, body, 0,
                              unroll=True if num_chunks <= 4 else False)
        return kernel


# ------------------------------ tiling plan --------------------------------

def _tile_plan(n_conformers, n_dihedrals, tile_rows):
    """Pick (tile_rows_eff, n_rows_pad): rows are groups of 128 conformers."""
    n_rows = max(1, -(-n_conformers // LANE))
    n_rows8 = ((n_rows + 7) // 8) * 8            # always multiple of 8 sublanes
    tr = min(tile_rows, n_rows8)
    tr = max(8, (tr // 8) * 8)
    # v7x: keep >=2 grid tiles whenever possible so the "parallel" axis can be
    # split across both TensorCores (no-op on v5e/v6e's single TC).
    if n_rows8 >= 16 and tr > n_rows8 // 2:
        tr = max(8, ((n_rows8 // 2) // 8) * 8)
    # v5e: keep double-buffered input tile + double-buffered output tile well
    # under the 16 MiB default scoped-VMEM limit (<=12 MiB budget).
    budget = 12 * 1024 * 1024

    def vmem_bytes(t):
        return (n_dihedrals * t * LANE * 4 * 2) + (t * LANE * 4 * 2)

    while tr > 8 and vmem_bytes(tr) > budget:
        tr -= 8
    n_rows_pad = -(-n_rows8 // tr) * tr
    return tr, n_rows_pad


def pack_dihedrals(dihedrals, tile_rows=256):
    """Repack (N, D[, 1]) dihedrals into the lane-dense (D, n_rows_pad, 128)
    layout.  Dihedrals are fixed across optimizer iterations, so call this ONCE
    per dataset and reuse the packed array (amortizes the transpose/pad)."""
    n = dihedrals.shape[0]
    n_dihedrals = dihedrals.shape[1]
    tr, n_rows_pad = _tile_plan(n, n_dihedrals, tile_rows)
    d2 = dihedrals.reshape(n, n_dihedrals).astype(jnp.float32).T   # (D, N)
    n_pad = n_rows_pad * LANE
    d2 = jnp.pad(d2, ((0, 0), (0, n_pad - n)))
    d3 = d2.reshape(n_dihedrals, n_rows_pad, LANE)
    return d3, n, tr


# ------------------------------ forward pass -------------------------------

def torsion_forward_packed(d3, k, phase, n_conformers, tile_rows_eff,
                           fix_phase=True):
    """d3:  (D, n_rows_pad, 128) packed dihedrals (from pack_dihedrals)
       k, phase: (1, D, order) f32 (periodicity is implicitly 1..order)
       returns (n_conformers,) f32 per-conformer torsion energy."""
    n_dihedrals, n_rows_pad, _ = d3.shape
    order = k.shape[-1]
    tr = tile_rows_eff

    # ---- fold phase / "1 +" constant into scalar coefficient tables ----
    kf = k.reshape(n_dihedrals, order).astype(jnp.float32)
    ph = phase.reshape(n_dihedrals, order).astype(jnp.float32)
    a_coef = (kf * jnp.cos(ph)).reshape(-1)        # (D*order,)  flat -> tiny SMEM
    const = jnp.sum(kf).reshape(1)                 # the "1 +" contribution

    # inner sub-chunk size: keep live vregs small inside a large tile
    chunk_rows = 32 if tr % 32 == 0 else (16 if tr % 16 == 0 else 8)
    num_chunks = tr // chunk_rows

    kernel = _make_kernel(n_dihedrals, order, chunk_rows, num_chunks,
                          cos_only=fix_phase)

    smem_spec = pl.BlockSpec(memory_space=pltpu.MemorySpace.SMEM)
    d_spec = pl.BlockSpec((n_dihedrals, tr, LANE), lambda i: (0, i, 0))
    o_spec = pl.BlockSpec((tr, LANE), lambda i: (i, 0))
    grid = (n_rows_pad // tr,)

    if fix_phase:
        in_specs = [smem_spec, smem_spec, d_spec]
        args = (const, a_coef, d3)
    else:
        b_coef = (kf * jnp.sin(ph)).reshape(-1)
        in_specs = [smem_spec, smem_spec, smem_spec, d_spec]
        args = (const, a_coef, b_coef, d3)

    out = pl.pallas_call(
        kernel,
        out_shape=jax.ShapeDtypeStruct((n_rows_pad, LANE), jnp.float32),
        grid=grid,
        in_specs=in_specs,
        out_specs=o_spec,
        compiler_params=pltpu.CompilerParams(
            dimension_semantics=("parallel",)),
    )(*args)

    return out.reshape(n_rows_pad * LANE)[:n_conformers]


def torsion_forward(dihedrals, k, phase, tile_rows=256, fix_phase=True):
    """Convenience wrapper (packs per call; prefer pack_dihedrals once)."""
    d3, n, tr = pack_dihedrals(dihedrals, tile_rows=tile_rows)
    return torsion_forward_packed(d3, k, phase, n, tr, fix_phase=fix_phase)


# ------------------------------- reference ---------------------------------

def make_params(n_dihedrals=2, order=4, key=None):
    """Mirror TorsionOptimizer.__init__ (k is zeros there; use small random k
    so the test is non-trivial)."""
    periodicity = np.zeros((1, n_dihedrals, order), dtype=np.float32)
    phase = np.zeros((1, n_dihedrals, order), dtype=np.float32)
    for i in range(order):
        periodicity[0, :, i] = i + 1
        phase[0, :, i] = 0.0 if i % 2 == 0 else np.pi
    if key is None:
        k = jnp.zeros((1, n_dihedrals, order), dtype=jnp.float32)
    else:
        k = 0.1 * jax.random.normal(key, (1, n_dihedrals, order),
                                    dtype=jnp.float32)
    return k, jnp.asarray(periodicity), jnp.asarray(phase)


def torsion_forward_ref(dihedrals, k, periodicity, phase):
    cos_val = (1.0 + jnp.cos(dihedrals * periodicity - phase)) * k
    return jnp.sum(cos_val, axis=(-1, -2))


# TODO(synk): loss/optimize/weight_function (Adam loop, MSE, energy weighting)
# are host-side training code and are not translated to Pallas.

if __name__ == "__main__":
    key = jax.random.PRNGKey(0)

    configs = [
        # (n_conformers, n_dihedrals, order, tile_rows, fix_phase)
        (200,   2, 4, 256, True),    # tiny N: single 8-row tile, cos-only path
        (3000,  3, 4, 16,  True),    # multi-tile grid, cos-only path
        (10000, 3, 4, 256, True),    # large tile + inner chunk fori_loop
        (1000,  2, 6, 256, False),   # general (arbitrary-phase) sin/cos path
    ]

    for idx, (n_conf, n_dih, order, trows, fixp) in enumerate(configs):
        cfg_key = jax.random.fold_in(key, idx)
        k_key, d_key, p_key = jax.random.split(cfg_key, 3)
        k, periodicity, phase = make_params(n_dih, order, key=k_key)
        if not fixp:
            phase = jax.random.uniform(p_key, phase.shape, minval=-np.pi,
                                       maxval=np.pi, dtype=jnp.float32)

        # dihedrals as produced by infer_parameters: (n_conformers, D, 1)
        dihedrals = jax.random.uniform(
            d_key, (n_conf, n_dih, 1),
            minval=-np.pi, maxval=np.pi, dtype=jnp.float32)

        # pack once per dataset (amortized across optimizer iterations); only
        # the k/phase-derived coefficients change per training step.
        packed, n, tr = pack_dihedrals(dihedrals, tile_rows=trows)
        out = torsion_forward_packed(packed, k, phase, n, tr, fix_phase=fixp)
        out = jax.block_until_ready(out)

        ref = torsion_forward_ref(dihedrals, k, periodicity, phase)
        assert out.shape == (n_conf,)
        np.testing.assert_allclose(np.asarray(out), np.asarray(ref),
                                   rtol=1e-5, atol=1e-5)

    print("KERNEL_OK")
</pallas_src>

<mosaic_0001>
module attributes {stable_mosaic.version = 11 : i64} {
  func.func @kernel(%arg0: i32, %arg1: memref<1xf32, #tpu.memory_space<smem>>, %arg2: memref<8xf32, #tpu.memory_space<smem>>, %arg3: memref<2x8x128xf32, #tpu.memory_space<vmem>>, %arg4: memref<8x128xf32, #tpu.memory_space<vmem>>) attributes {dimension_semantics = [#tpu.dimension_semantics<parallel>], iteration_bounds = array<i64: 1>, scalar_prefetch = 0 : i64, scratch_operands = 0 : i64, tpu.core_type = #tpu.core_type<tc>, window_params = [{transform_indices = @transform_0, window_bounds = array<i64: 1>}, {transform_indices = @transform_1, window_bounds = array<i64: 8>}, {transform_indices = @transform_2, window_bounds = array<i64: 2, 8, 128>}, {transform_indices = @transform_3, window_bounds = array<i64: 8, 128>}]} {
    %c0 = arith.constant 0 : index
    %0 = memref.load %arg1[%c0] : memref<1xf32, #tpu.memory_space<smem>>
    %1 = vector.broadcast %0 : f32 to vector<8x128xf32>
    %c0_0 = arith.constant 0 : index
    %c0_1 = arith.constant 0 : index
    %c0_2 = arith.constant 0 : index
    %2 = vector.load %arg3[%c0_0, %c0_1, %c0_2] : memref<2x8x128xf32, #tpu.memory_space<vmem>>, vector<1x8x128xf32>
    %3 = vector.shape_cast %2 : vector<1x8x128xf32> to vector<8x128xf32>
    %4 = math.cos %3 : vector<8x128xf32>
    %c0_3 = arith.constant 0 : index
    %5 = memref.load %arg2[%c0_3] : memref<8xf32, #tpu.memory_space<smem>>
    %6 = vector.broadcast %5 : f32 to vector<8x128xf32>
    %7 = arith.mulf %6, %4 : vector<8x128xf32>
    %8 = arith.addf %1, %7 : vector<8x128xf32>
    %9 = arith.addf %4, %4 : vector<8x128xf32>
    %10 = arith.mulf %9, %4 : vector<8x128xf32>
    %cst = arith.constant 1.000000e+00 : f32
    %11 = vector.broadcast %cst : f32 to vector<8x128xf32>
    %12 = arith.subf %10, %11 : vector<8x128xf32>
    %c1 = arith.constant 1 : index
    %13 = memref.load %arg2[%c1] : memref<8xf32, #tpu.memory_space<smem>>
    %14 = vector.broadcast %13 : f32 to vector<8x128xf32>
    %15 = arith.mulf %14, %12 : vector<8x128xf32>
    %16 = arith.addf %8, %15 : vector<8x128xf32>
    %17 = arith.mulf %9, %12 : vector<8x128xf32>
    %18 = arith.subf %17, %4 : vector<8x128xf32>
    %c2 = arith.constant 2 : index
    %19 = memref.load %arg2[%c2] : memref<8xf32, #tpu.memory_space<smem>>
    %20 = vector.broadcast %19 : f32 to vector<8x128xf32>
    %21 = arith.mulf %20, %18 : vector<8x128xf32>
    %22 = arith.addf %16, %21 : vector<8x128xf32>
    %23 = arith.mulf %9, %18 : vector<8x128xf32>
    %24 = arith.subf %23, %12 : vector<8x128xf32>
    %c3 = arith.constant 3 : index
    %25 = memref.load %arg2[%c3] : memref<8xf32, #tpu.memory_space<smem>>
    %26 = vector.broadcast %25 : f32 to vector<8x128xf32>
    %27 = arith.mulf %26, %24 : vector<8x128xf32>
    %28 = arith.addf %22, %27 : vector<8x128xf32>
    %c1_4 = arith.constant 1 : index
    %c0_5 = arith.constant 0 : index
    %c0_6 = arith.constant 0 : index
    %29 = vector.load %arg3[%c1_4, %c0_5, %c0_6] : memref<2x8x128xf32, #tpu.memory_space<vmem>>, vector<1x8x128xf32>
    %30 = vector.shape_cast %29 : vector<1x8x128xf32> to vector<8x128xf32>
    %31 = math.cos %30 : vector<8x128xf32>
    %c4 = arith.constant 4 : index
    %32 = memref.load %arg2[%c4] : memref<8xf32, #tpu.memory_space<smem>>
    %33 = vector.broadcast %32 : f32 to vector<8x128xf32>
    %34 = arith.mulf %33, %31 : vector<8x128xf32>
    %35 = arith.addf %28, %34 : vector<8x128xf32>
    %36 = arith.addf %31, %31 : vector<8x128xf32>
    %37 = arith.mulf %36, %31 : vector<8x128xf32>
    %cst_7 = arith.constant 1.000000e+00 : f32
    %38 = vector.broadcast %cst_7 : f32 to vector<8x128xf32>
    %39 = arith.subf %37, %38 : vector<8x128xf32>
    %c5 = arith.constant 5 : index
    %40 = memref.load %arg2[%c5] : memref<8xf32, #tpu.memory_space<smem>>
    %41 = vector.broadcast %40 : f32 to vector<8x128xf32>
    %42 = arith.mulf %41, %39 : vector<8x128xf32>
    %43 = arith.addf %35, %42 : vector<8x128xf32>
    %44 = arith.mulf %36, %39 : vector<8x128xf32>
    %45 = arith.subf %44, %31 : vector<8x128xf32>
    %c6 = arith.constant 6 : index
    %46 = memref.load %arg2[%c6] : memref<8xf32, #tpu.memory_space<smem>>
    %47 = vector.broadcast %46 : f32 to vector<8x128xf32>
    %48 = arith.mulf %47, %45 : vector<8x128xf32>
    %49 = arith.addf %43, %48 : vector<8x128xf32>
    %50 = arith.mulf %36, %45 : vector<8x128xf32>
    %51 = arith.subf %50, %39 : vector<8x128xf32>
    %c7 = arith.constant 7 : index
    %52 = memref.load %arg2[%c7] : memref<8xf32, #tpu.memory_space<smem>>
    %53 = vector.broadcast %52 : f32 to vector<8x128xf32>
    %54 = arith.mulf %53, %51 : vector<8x128xf32>
    %55 = arith.addf %49, %54 : vector<8x128xf32>
    %c0_8 = arith.constant 0 : index
    %c0_9 = arith.constant 0 : index
    %56 = vector.load %arg4[%c0_8, %c0_9] : memref<8x128xf32, #tpu.memory_space<vmem>>, vector<8x128xf32>
    tpu.vector_store %arg4[%c0_8, %c0_9], %55 {strides = array<i32>} : memref<8x128xf32, #tpu.memory_space<vmem>>, vector<8x128xf32>,
    return
  }
  func.func @transform_0(%arg0: i32) -> i32 {
    %c0_i32 = arith.constant 0 : i32
    %c0_i32_0 = arith.constant 0 : i32
    return %c0_i32 : i32
  }
  func.func @transform_1(%arg0: i32) -> i32 {
    %c0_i32 = arith.constant 0 : i32
    %c0_i32_0 = arith.constant 0 : i32
    return %c0_i32 : i32
  }
  func.func @transform_2(%arg0: i32) -> (i32, i32, i32) {
    %c0_i32 = arith.constant 0 : i32
    %c0_i32_0 = arith.constant 0 : i32
    %c0_i32_1 = arith.constant 0 : i32
    return %c0_i32, %arg0, %c0_i32_0 : i32, i32, i32
  }
  func.func @transform_3(%arg0: i32) -> (i32, i32) {
    %c0_i32 = arith.constant 0 : i32
    %c0_i32_0 = arith.constant 0 : i32
    return %arg0, %c0_i32 : i32, i32
  }
}

</mosaic_0001>

<bundles_post_ra>
// kernel: tpu_custom_call.1
= control target key start
LH: loop header
LB: loop body
LE: loop exit
PB: predicated region body
PF: predicated region fallthrough
CT: control target
= control target key end

     0   :  { %9 = vsyncpa [#allocation6], 0  ;;  %s565_s0 = inlined_call_operand.<no memory space> [shape: f32[1], index: 0, kind: input, shape index: {}]   ;;  %s566_s1 = inlined_call_operand.vmem [shape: f32[8], index: 1, kind: input, shape index: {}]   ;;  %s567_s2 = inlined_call_operand.hbm [shape: f32[2,8,128], index: 2, kind: input, shape index: {}]   ;;  %s568_s3 = inlined_call_operand.hbm [shape: f32[8,128], index: 3, kind: output, shape index: {}]  }
   0x1   :  { %10 = vsyncpa [#allocation4], 0 }
   0x2   :  { %11 = vsyncpa [#allocation5], 0  ;;  %s20_s14 = sshll.u32 %s566_s1, 4  ;;  %s21_s14 = int_to_ptr.vmem [resolvable:$true] %s20_s14 }
   0x3   :  { %s361_s15 = scalar_lea.vmem %s21_s14, 16  ;;  %p366_p1 = scmp.lt.s32.totalorder %s21_s14, %s21_s14 }
   0x4   :  { %p362_p0 = scmp.ne.s32.totalorder %s21_s14, %s361_s15  ;;  %p367_p2 = scmp.lt.s32.totalorder %s361_s15, %s361_s15 }
   0x6   :  { %p368_p3 = por %p367_p2, %p366_p1 }
   0x8   :  { %p369_p4 = pnand %p368_p3, %p362_p0 }
   0xa   :  { %372 = shalt.err (!%p369_p4)
}
   0xb   :  { %s423_s16 = smov [#allocation3]   ;;  %s424_s17 = smov [#allocation7]  }
   0xc   :  { %23 = dma.vmem_to_smem %s21_s14, 16, %s423_s16, [#allocation6]  }
   0xd   :  { %s29_s18 = sshll.u32 %s424_s17, 4  ;;  %s373_s21 = scalar_lea.hbm %s567_s2, 256  ;;  %s30_s18 = int_to_ptr.vmem [resolvable:$true] %s29_s18 }
   0xe   :  { %p374_p5 = scmp.ne.s32.totalorder %s567_s2, %s373_s21  ;;  %p377_p6 = scmp.lt.u32.totalorder %s373_s21, %s567_s2 }
  0x10   :  { %p379_p7 = pnand %p377_p6, %p374_p5 }
  0x12   :  { %382 = shalt.err (!%p379_p7)
}
  0x13   :  { %s383_s25 = scalar_lea.vmem %s30_s18, 256  ;;  %p388_p9 = scmp.lt.s32.totalorder %s30_s18, %s30_s18 }
  0x14   :  { %p384_p8 = scmp.ne.s32.totalorder %s30_s18, %s383_s25  ;;  %p389_p10 = scmp.lt.s32.totalorder %s383_s25, %s383_s25 }
  0x16   :  { %p390_p11 = por %p389_p10, %p388_p9 }
  0x18   :  { %p391_p12 = pnand %p390_p11, %p384_p8 }
  0x1a   :  { %394 = shalt.err (!%p391_p12)
}
  0x1b   :  { %s425_s26 = smov 128   ;;  %s426_s27 = smov 8  }
  0x1c   :  { %35 = dma.hbm_to_vmem [thread:$0]  %s567_s2, 256, %s30_s18, [#allocation4], %s425_s26, %s425_s26, %s426_s27  }
  0x1d   :  { %417 = dma.done.wait [#allocation6], 16  }
  0x1e   :  { %418 = vsyncadd [#allocation6], 4294967280 }
  0x1f   :  { %419 = dma.done.wait [#allocation4], 256  }
  0x20   :  { %420 = vsyncadd [#allocation4], 4294967040 }
  0x21   :  { %42 = sfence }
  0x22   :  { %v469_v0 = vld [vmem:[#allocation7] sm:$0xff]  ;;  %v473_v4 = vld [vmem:[#allocation7 + $0x8] sm:$0xff]  ;;  %v427_v20 = vmov 683565275   ;;  %v428_v22 = vmov 2475754826  }
  0x23   :  { %v46_v1 = vand.u32 2147483647, %v469_v0  ;;  %v49_v2 = vand.u32 2139095040, %v469_v0  ;;  %v174_v7 = vand.u32 2147483647, %v473_v4  ;;  %v177_v8 = vand.u32 2139095040, %v473_v4 }
  0x24   :  { %v429_v24 = vmov 2131351028   ;;  %v430_v26 = vmov 2102212464   ;;  %v431_v28 = vmov 920167782  }
  0x25   :  { %v50_v3 = vshrl.u32 %v49_v2, 23  ;;  %v53_v5 = vand.u32 8388607, %v46_v1  ;;  %v178_v11 = vshrl.u32 %v177_v8, 23  ;;  %v181_v14 = vand.u32 8388607, %v174_v7 }
  0x26   :  { %v432_v36 = vmov 1326507024   ;;  %vm48_vm14 = vcmp.lt.s32.totalorder %v469_v0, 0  ;;  %vm521_vm15 = vcmp.le.f32.partialorder %v46_v1, 0.7853982  ;;  %s149_s2 = sld [smem:[#allocation3]] }
  0x27   :  { %v317_v6 = vadd.s32 4294967169, %v50_v3  ;;  %v54_v10 = vor.u32 8388608, %v53_v5  ;;  %v325_v13 = vadd.s32 4294967169, %v178_v11  ;;  %v182_v30 = vor.u32 8388608, %v181_v14  ;;  %s322_s30 = sld [smem:[#allocation3 + $0x1]]  ;;  %s323_s4 = sld [smem:[#allocation3 + $0x2]] }
  0x28   :  { %s546_s7 = sld [smem:[#allocation3 + $0x3]]  ;;  %s548_s8 = sld [smem:[#allocation3 + $0x4]] }
  0x29   :  { %v56_v9 = vadd.s32 1, %v317_v6  ;;  %v481_v17 = vshll.u32 %v54_v10, 8  ;;  %v184_v18 = vadd.s32 1, %v325_v13  ;;  %v222_v58 = vshll.u32 %v182_v30, 8  ;;  %s332_s9 = sld [smem:[#allocation3 + $0x6]]  ;;  %s333_s10 = sld [smem:[#allocation3 + $0x7]] }
  0x2a   :  { %s433_s11 = smov [#allocation8]  }
  0x2b   :  { %vm57_vm0 = vcmp.gt.s32.totalorder %v56_v9, 0  ;;  %vm185_vm4 = vcmp.gt.s32.totalorder %v184_v18, 0  ;;  %s307_s12 = sshll.u32 %s433_s11, 4  ;;  %s308_s12 = int_to_ptr.vmem [resolvable:$true] %s307_s12 }
  0x2c   :  { %v58_v12 = vsel %vm57_vm0, %v56_v9, 0  ;;  %v186_v43 = vsel %vm185_vm4, %v184_v18, 0  ;;  %vm176_vm0 = vcmp.lt.s32.totalorder %v473_v4, 0  ;;  %s395_s13 = scalar_lea.vmem %s308_s12, 128  ;;  %p400_p0 = scmp.lt.s32.totalorder %s308_s12, %s308_s12 }
  0x2d   :  { %v59_v15 = vshrl.u32 %v58_v12, 5  ;;  %v60_v16 = vand.u32 31, %v58_v12  ;;  %v187_v53 = vshrl.u32 %v186_v43, 5  ;;  %v188_v54 = vand.u32 31, %v186_v43  ;;  %p396_p13 = scmp.ne.s32.totalorder %s308_s12, %s395_s13  ;;  %p401_p1 = scmp.lt.s32.totalorder %s395_s13, %s395_s13 }
  0x2f   :  { %v61_v19 = vsub.s32 32, %v60_v16  ;;  %v63_v21 = vshll.u32 %v427_v20, %v60_v16  ;;  %v66_v23 = vshll.u32 %v428_v22, %v60_v16  ;;  %v69_v25 = vshll.u32 %v429_v24, %v60_v16  ;;  %p402_p2 = por %p401_p1, %p400_p0 }
  0x30   :  { %v72_v27 = vshll.u32 %v430_v26, %v60_v16  ;;  %v75_v29 = vshll.u32 %v431_v28, %v60_v16  ;;  %vm78_vm1 = vcmp.lt.s32.totalorder %v59_v15, 1  ;;  %vm79_vm2 = vcmp.lt.s32.totalorder %v59_v15, 2 }
  0x31   :  { %v62_v31 = vshrl.u32 %v427_v20, %v61_v19  ;;  %v64_v32 = vshrl.u32 %v428_v22, %v61_v19  ;;  %v67_v33 = vshrl.u32 %v429_v24, %v61_v19  ;;  %v70_v34 = vshrl.u32 %v430_v26, %v61_v19  ;;  %p403_p3 = pnand %p402_p2, %p396_p13 }
  0x32   :  { %v73_v35 = vshrl.u32 %v431_v28, %v61_v19  ;;  %v76_v37 = vshrl.u32 %v432_v36, %v61_v19  ;;  %vm81_vm3 = vcmp.lt.s32.totalorder %v59_v15, 4  ;;  %vm80_vm5 = vcmp.lt.s32.totalorder %v59_v15, 3 }
  0x33   :  { %v65_v38 = vor.u32 %v64_v32, %v63_v21  ;;  %v68_v39 = vor.u32 %v67_v33, %v66_v23  ;;  %v71_v40 = vor.u32 %v70_v34, %v69_v25  ;;  %v189_v63 = vsub.s32 32, %v188_v54 }
  0x34   :  { %v74_v41 = vor.u32 %v73_v35, %v72_v27  ;;  %v77_v42 = vor.u32 %v76_v37, %v75_v29  ;;  %v191_v2 = vshll.u32 %v427_v20, %v188_v54  ;;  %v194_v3 = vshll.u32 %v428_v22, %v188_v54 }
  0x35   :  { %v82_v44 = vsel %vm78_vm1, %v62_v31, %v65_v38  ;;  %v83_v45 = vsel %vm81_vm3, %v71_v40, 2102212464  ;;  %v86_v46 = vsel %vm78_vm1, %v65_v38, %v68_v39  ;;  %v90_v47 = vsel %vm78_vm1, %v68_v39, %v71_v40 }
  0x36   :  { %v84_v48 = vsel %vm80_vm5, %v68_v39, %v83_v45  ;;  %v87_v49 = vsel %vm81_vm3, %v74_v41, 920167782  ;;  %v91_v50 = vsel %vm81_vm3, %v77_v42, 1326507024  ;;  %v197_v5 = vshll.u32 %v429_v24, %v188_v54 }
  0x37   :  { %v88_v51 = vsel %vm80_vm5, %v71_v40, %v87_v49  ;;  %v92_v52 = vsel %vm80_vm5, %v74_v41, %v91_v50  ;;  %v85_v55 = vsel %vm79_vm2, %v82_v44, %v84_v48  ;;  %v200_v8 = vshll.u32 %v430_v26, %v188_v54 }
  0x38   :  { %v89_v56 = vsel %vm79_vm2, %v86_v46, %v88_v51  ;;  %v93_v57 = vsel %vm79_vm2, %v90_v47, %v92_v52  ;;  %v101_v6 = vmul.u32 %v481_v17, %v85_v55  ;;  %v203_v9 = vshll.u32 %v431_v28, %v188_v54 }
  0x39   :  { %v490_v59 = vmul.u32.u64.low %v481_v17, %v93_v57  ;;  %v491_v60 = vmul.u32.u64.high %v481_v17, %v93_v57, %v490_v59  ;;  %v494_v61 = vmul.u32.u64.low %v481_v17, %v89_v56  ;;  %v495_v62 = vmul.u32.u64.high %v481_v17, %v89_v56, %v494_v61 }
  0x3a   :  { %vm206_vm6 = vcmp.lt.s32.totalorder %v187_v53, 1  ;;  %v190_v10 = vshrl.u32 %v427_v20, %v189_v63  ;;  %v192_v11 = vshrl.u32 %v428_v22, %v189_v63  ;;  %v195_v12 = vshrl.u32 %v429_v24, %v189_v63 }
  0x3b   :  { %v198_v13 = vshrl.u32 %v430_v26, %v189_v63  ;;  %vm103_vm7 = vc.u32 %v491_v60, %v494_v61  ;;  %v104_v14 = vadd.s32 1, %v495_v62  ;;  %v201_v15 = vshrl.u32 %v431_v28, %v189_v63 }
  0x3c   :  { %vm207_vm8 = vcmp.lt.s32.totalorder %v187_v53, 2  ;;  %v193_v16 = vor.u32 %v192_v11, %v191_v2  ;;  %v196_v18 = vor.u32 %v195_v12, %v194_v3  ;;  %v204_v21 = vshrl.u32 %v432_v36, %v189_v63 }
  0x3d   :  { %v199_v19 = vor.u32 %v198_v13, %v197_v5  ;;  %v105_v23 = vsel %vm103_vm7, %v104_v14, %v495_v62  ;;  %v202_v17 = vor.u32 %v201_v15, %v200_v8  ;;  %vm208_vm9 = vcmp.lt.s32.totalorder %v187_v53, 3 }
  0x3e   :  { %vm209_vm10 = vcmp.lt.s32.totalorder %v187_v53, 4  ;;  %v106_v25 = vadd.s32 %v105_v23, %v101_v6  ;;  %v205_v20 = vor.u32 %v204_v21, %v203_v9  ;;  %v210_v22 = vsel %vm206_vm6, %v190_v10, %v193_v16 }
  0x3f   :  { %v211_v24 = vsel %vm209_vm10, %v199_v19, 2102212464  ;;  %v214_v27 = vsel %vm206_vm6, %v193_v16, %v196_v18  ;;  %v215_v29 = vsel %vm209_vm10, %v202_v17, 920167782  ;;  %v218_v28 = vsel %vm206_vm6, %v196_v18, %v199_v19 }
  0x40   :  { %v212_v26 = vsel %vm208_vm9, %v196_v18, %v211_v24  ;;  %v107_v30 = vadd.s32 536870912, %v106_v25  ;;  %v216_v31 = vsel %vm208_vm9, %v199_v19, %v215_v29  ;;  %v219_v32 = vsel %vm209_vm10, %v205_v20, 1326507024 }
  0x41   :  { %v213_v33 = vsel %vm207_vm8, %v210_v22, %v212_v26  ;;  %v217_v34 = vsel %vm207_vm8, %v214_v27, %v216_v31  ;;  %v220_v35 = vsel %vm208_vm9, %v202_v17, %v219_v32  ;;  %v102_v55 = vadd.s32 %v494_v61, %v491_v60 }
  0x42   :  { %v108_v36 = vshrl.u32 %v107_v30, 30  ;;  %v221_v37 = vsel %vm207_vm8, %v218_v28, %v220_v35  ;;  %v507_v38 = vmul.u32.u64.low %v222_v58, %v217_v34  ;;  %v508_v39 = vmul.u32.u64.high %v222_v58, %v217_v34, %v507_v38 }
  0x43   :  { %v510_v40 = vmul.u32.u64.low %v222_v58, %v221_v37  ;;  %v511_v41 = vmul.u32.u64.high %v222_v58, %v221_v37, %v510_v40  ;;  %v229_v43 = vmul.u32 %v222_v58, %v213_v33  ;;  %vm533_vm1 = vcmp.le.f32.partialorder %v174_v7, 0.7853982 }
  0x44   :  { %v109_v42 = vshll.u32 %v108_v36, 30  ;;  %v232_v45 = vadd.s32 1, %v508_v39  ;;  %v132_v23 = vsub.s32 4, %v108_v36  ;;  %vm138_vm5 = vweird.f32 %v469_v0 }
  0x45   :  { %vm231_vm11 = vc.u32 %v511_v41, %v507_v38  ;;  %v230_v14 = vadd.s32 %v507_v38, %v511_v41  ;;  %vm266_vm9 = vweird.f32 %v473_v4 }
  0x46   :  { %v110_v44 = vsub.s32 %v106_v25, %v109_v42  ;;  %v233_v47 = vsel %vm231_vm11, %v232_v45, %v508_v39  ;;  %v133_v27 = vsel %vm48_vm14, %v132_v23, %v108_v36 }
  0x47   :  { %v234_v48 = vadd.s32 %v233_v47, %v229_v43  ;;  %v135_v1 = vsel %vm521_vm15, 0, %v133_v27 }
  0x48   :  { %v112_v46 = vsub.s32 0, %v110_v44  ;;  %v139_v32 = vand.u32 3, %v135_v1 }
  0x49   :  { %v235_v50 = vadd.s32 536870912, %v234_v48 }
  0x4a   :  { %v318_v49 = vmin.u32 %v112_v46, %v110_v44  ;;  %vm144_vm2 = vcmp.eq.s32.totalorder %v139_v32, 2  ;;  %vm141_vm3 = vcmp.eq.s32.totalorder %v139_v32, 0  ;;  %vm140_vm4 = vcmp.lt.s32.totalorder %v139_v32, 2 }
  0x4b   :  { %v236_v52 = vshrl.u32 %v235_v50, 30 }
  0x4c   :  { %v114_v51 = vclz %v318_v49 }
  0x4d   :  { %v237_v54 = vshll.u32 %v236_v52, 30  ;;  %v260_v35 = vsub.s32 4, %v236_v52 }
  0x4e   :  { %v319_v53 = vadd.s32 4294967294, %v114_v51  ;;  %v44_v51 = vstv %s565_s0  ;;  %s331_s0 = sld [smem:[#allocation3 + $0x5]] }
  0x4f   :  { %v238_v57 = vsub.s32 %v234_v48, %v237_v54  ;;  %v261_v41 = vsel %vm176_vm0, %v260_v35, %v236_v52 }
  0x50   :  { %vm320_vm12 = vcmp.lt.s32.totalorder %v319_v53, 0  ;;  %v263_v45 = vsel %vm533_vm1, 0, %v261_v41 }
  0x51   :  { %v117_v56 = vsel %vm320_vm12, 0, %v319_v53  ;;  %v240_v63 = vsub.s32 0, %v238_v57  ;;  %v267_v50 = vand.u32 3, %v263_v45  ;;  %v157_v53 = vstv %s322_s30 }
  0x52   :  { %v118_v58 = vsub.s32 32, %v117_v56  ;;  %v119_v59 = vshll.u32 %v110_v44, %v117_v56  ;;  %v122_v62 = vsub.s32 4294967266, %v117_v56  ;;  %v150_v44 = vstv %s149_s2 }
  0x53   :  { %v326_v5 = vmin.u32 %v240_v63, %v238_v57  ;;  %vm272_vm6 = vcmp.eq.s32.totalorder %v267_v50, 2  ;;  %vm269_vm7 = vcmp.eq.s32.totalorder %v267_v50, 0  ;;  %vm268_vm8 = vcmp.lt.s32.totalorder %v267_v50, 2 }
  0x54   :  { %v120_v2 = vshrl.u32 %v102_v55, %v118_v58  ;;  %v123_v3 = vadd.s32 127, %v122_v62  ;;  %v163_v63 = vstv %s323_s4  ;;  %v285_v19 = vstv %s331_s0 }
  0x55   :  { %v242_v9 = vclz %v326_v5 }
  0x56   :  { %v121_v6 = vor.u32 %v120_v2, %v119_v59  ;;  %v124_v8 = vshll.u32 %v123_v3, 23 }
  0x57   :  { %v327_v12 = vadd.s32 4294967294, %v242_v9 }
  0x58   :  { %v125_v10 = vor.u32 4788187, %v124_v8  ;;  %v128_v11 = vcvt.s32.f32 %v121_v6 }
  0x59   :  { %vm328_vm13 = vcmp.lt.s32.totalorder %v327_v12, 0 }
  0x5a   :  { %v126_v13 = vand.u32 2147483647, %v125_v10  ;;  %v245_v61 = vsel %vm328_vm13, 0, %v327_v12  ;;  %v169_v12 = vstv %s546_s7 }
  0x5b   :  { %v246_v15 = vsub.s32 32, %v245_v61  ;;  %v247_v16 = vshll.u32 %v238_v57, %v245_v61  ;;  %v250_v18 = vsub.s32 4294967266, %v245_v61 }
  0x5c   :  { %v129_v60 = vmul.f32 %v128_v11, %v126_v13  ;;  %v278_v13 = vstv %s548_s8 }
  0x5d   :  { %v248_v17 = vshrl.u32 %v230_v14, %v246_v15  ;;  %v251_v25 = vadd.s32 127, %v250_v18 }
  0x5e   :  { %v130_v21 = vxor.u32 2147483648, %v129_v60 }
  0x5f   :  { %v249_v24 = vor.u32 %v248_v17, %v247_v16  ;;  %v252_v26 = vshll.u32 %v251_v25, 23 }
  0x60   :  { %v131_v20 = vsel %vm48_vm14, %v130_v21, %v129_v60 }
  0x61   :  { %v134_v22 = vsel %vm521_vm15, %v469_v0, %v131_v20  ;;  %v253_v29 = vor.u32 4788187, %v252_v26  ;;  %v256_v28 = vcvt.s32.f32 %v249_v24  ;;  %v291_v20 = vstv %s332_s9 }
  0x62   :  { %353 = vcosq.f32 %v134_v22 }
  0x63   :  { %355 = vsinq.f32 %v134_v22  ;;  %v254_v30 = vand.u32 2147483647, %v253_v29  ;;  %v297_v29 = vstv %s333_s10 }
  0x65   :  { %v257_v31 = vmul.f32 %v256_v28, %v254_v30 }
  0x67   :  { %v258_v34 = vxor.u32 2147483648, %v257_v31 }
  0x69   :  { %v259_v36 = vsel %vm176_vm0, %v258_v34, %v257_v31 }
  0x6a   :  { %v262_v38 = vsel %vm533_vm1, %v473_v4, %v259_v36 }
  0x6b   :  { %357 = vcosq.f32 %v262_v38 }
  0x6c   :  { %v354_v37 = vpop.eup %353  ;;  %359 = vsinq.f32 %v262_v38 }
  0x6d   :  { %v356_v39 = vpop.eup %355  ;;  %v145_v40 = vxor.u32 2147483648, %v354_v37 }
  0x6e   :  { %v142_v42 = vxor.u32 2147483648, %v356_v39 }
  0x6f   :  { %v146_v7 = vsel %vm144_vm2, %v145_v40, %v356_v39 }
  0x70   :  { %v143_v43 = vsel %vm141_vm3, %v354_v37, %v142_v42 }
  0x71   :  { %v147_v46 = vsel %vm140_vm4, %v143_v43, %v146_v7 }
  0x72   :  { %v148_v47 = vsel %vm138_vm5, nan, %v147_v46 }
  0x73   :  { %v151_v48 = vmul.f32 %v150_v44, %v148_v47  ;;  %v153_v49 = vadd.f32 %v148_v47, %v148_v47 }
  0x75   :  { %v154_v52 = vmul.f32 %v153_v49, %v148_v47  ;;  %v358_v0 = vpop.eup %357  ;;  %v152_v54 = vadd.f32 %v151_v48, %v44_v51 }
  0x76   :  { %v360_v56 = vpop.eup %359  ;;  %v273_v57 = vxor.u32 2147483648, %v358_v0 }
  0x77   :  { %v321_v55 = vadd.f32 -1.0, %v154_v52  ;;  %v270_v62 = vxor.u32 2147483648, %v360_v56 }
  0x78   :  { %v274_v2 = vsel %vm272_vm6, %v273_v57, %v360_v56 }
  0x79   :  { %v158_v58 = vmul.f32 %v321_v55, %v157_v53  ;;  %v160_v59 = vmul.f32 %v321_v55, %v153_v49  ;;  %v271_v6 = vsel %vm269_vm7, %v358_v0, %v270_v62 }
  0x7a   :  { %v275_v8 = vsel %vm268_vm8, %v271_v6, %v274_v2 }
  0x7b   :  { %v159_v3 = vadd.f32 %v158_v58, %v152_v54  ;;  %v161_v5 = vsub.f32 %v160_v59, %v148_v47  ;;  %v276_v11 = vsel %vm266_vm9, nan, %v275_v8 }
  0x7c   :  { %v281_v14 = vadd.f32 %v276_v11, %v276_v11  ;;  %v279_v18 = vmul.f32 %v278_v13, %v276_v11 }
  0x7d   :  { %v164_v9 = vmul.f32 %v163_v63, %v161_v5  ;;  %v166_v10 = vmul.f32 %v161_v5, %v153_v49 }
  0x7e   :  { %v282_v15 = vmul.f32 %v281_v14, %v276_v11 }
  0x7f   :  { %v165_v60 = vadd.f32 %v164_v9, %v159_v3  ;;  %v167_v61 = vsub.f32 %v166_v10, %v321_v55 }
  0x80   :  { %v330_v4 = vadd.f32 -1.0, %v282_v15 }
  0x81   :  { %v170_v16 = vmul.f32 %v169_v12, %v167_v61 }
  0x82   :  { %v286_v23 = vmul.f32 %v330_v4, %v285_v19  ;;  %v288_v17 = vmul.f32 %v330_v4, %v281_v14 }
  0x83   :  { %v171_v21 = vadd.f32 %v170_v16, %v165_v60 }
  0x84   :  { %v289_v22 = vsub.f32 %v288_v17, %v276_v11 }
  0x85   :  { %v280_v25 = vadd.f32 %v279_v18, %v171_v21 }
  0x86   :  { %v292_v26 = vmul.f32 %v291_v20, %v289_v22  ;;  %v294_v27 = vmul.f32 %v289_v22, %v281_v14 }
  0x87   :  { %v287_v24 = vadd.f32 %v286_v23, %v280_v25 }
  0x88   :  { %v295_v1 = vsub.f32 %v294_v27, %v330_v4 }
  0x89   :  { %v293_v28 = vadd.f32 %v292_v26, %v287_v24 }
  0x8a   :  { %v298_v30 = vmul.f32 %v297_v29, %v295_v1 }
  0x8c   :  { %v299_v31 = vadd.f32 %v298_v30, %v293_v28 }
  0x8e   :  { %300 = vst [vmem:[#allocation8] sm:$0xff] %v299_v31 }
  0x8f   :  { %406 = shalt.err (!%p403_p3)
}
  0x90   :  { %s407_s16 = scalar_lea.hbm %s568_s3, 128 }
  0x91   :  { %p408_p4 = scmp.ne.s32.totalorder %s568_s3, %s407_s16  ;;  %p411_p5 = scmp.lt.u32.totalorder %s407_s16, %s568_s3 }
  0x93   :  { %p413_p6 = pnand %p411_p5, %p408_p4 }
  0x95   :  { %416 = shalt.err (!%p413_p6)
}
  0x96   :  { %310 = dma.vmem_to_hbm [thread:$0]  %s308_s12, 128, %s568_s3, [#allocation5]  }
  0x97   :  { %421 = dma.done.wait [#allocation5], 128  }
  0x98   :  { %422 = vsyncadd [#allocation5], 4294967168 }
  0x99   :  { %314 = vsyncpa [#allocation4], 1 }
  0x9a   :  { %315 = vsyncpa [#allocation5], 1 }
  0x9b   :  { %316 = vsyncpa [#allocation6], 1 }

</bundles_post_ra>
